<compile_context>
chip_gen: v7x
topology: tpu7x:2x2x1
jax: 0.10.0
libtpu: 0.0.40
codegen_flags: <defaults>
</compile_context>

<pallas_src>
import functools
import math

import jax
import jax.numpy as jnp
from jax.experimental import pallas as pl
from jax.experimental.pallas import tpu as pltpu


# ----------------------------------------------------------------------------
# Helpers
# ----------------------------------------------------------------------------

def _row_tile(M, prefer=512):
    """Largest power-of-two row tile <= prefer that divides M (falls back to M)."""
    for t in (512, 256, 128, 64, 32, 16, 8):
        if t <= prefer and M % t == 0:
            return t
    return M


@functools.lru_cache(maxsize=None)
def _vmem_limit_bytes():
    """~55% of physical VMEM, capped at 80 MiB (safe on v7x 64 MiB, roomy on v5e/v6e)."""
    try:
        cap = pltpu.get_tpu_info().vmem_capacity_bytes
    except Exception:  # pragma: no cover - fallback if the query is unavailable
        cap = 128 * 1024 * 1024
    return int(min(cap * 11 // 20, 80 * 1024 * 1024))


def _cparams(*semantics):
    return pltpu.CompilerParams(
        dimension_semantics=semantics,
        vmem_limit_bytes=_vmem_limit_bytes(),
    )


def _layernorm_f32(h, gamma, beta, eps):
    mu = jnp.mean(h, axis=-1, keepdims=True)
    var = jnp.mean(jnp.square(h - mu), axis=-1, keepdims=True)
    return (h - mu) * jax.lax.rsqrt(var + eps) * gamma + beta


# ----------------------------------------------------------------------------
# Pallas kernels
# ----------------------------------------------------------------------------

def _ln_kernel(x_ref, g_ref, b_ref, o_ref, *, eps):
    """o = LayerNorm(x) * g + b  (LN statistics in f32)."""
    h = x_ref[...].astype(jnp.float32)
    o_ref[...] = _layernorm_f32(h, g_ref[...], b_ref[...], eps).astype(o_ref.dtype)


def _attention_block_kernel(x_ref, wqkv_ref, bqkv_ref, m_ref, wo_ref, bo_ref,
                            g_ref, bln_ref, o_ref, *, num_heads, scale, eps):
    """Full attention block for one batch element.

    x_ref:    (1, S, H)  bf16 layer input (also the residual).
    wqkv_ref: (H, 3H)    bf16 fused [q|k|v] projection weight (resident).
    bqkv_ref: (1, 3H)    f32 fused bias.
    m_ref:    (1, 1, S)  f32 additive attention mask.
    wo_ref:   (H, H)     bf16 output projection weight (resident).
    bo_ref, g_ref, bln_ref: (1, H) f32 bias / LN gamma / LN beta.
    o_ref:    (1, S, H)  bf16 = LayerNorm(attn_out @ wo + bo + x).
    """
    x = x_ref[0]                           # (S, H) bf16
    m = m_ref[0]                           # (1, S) f32
    H = x.shape[1]
    dH = H // num_heads

    # Fused QKV projection: x is read once, qkv never leaves VMEM.
    qkv = (jnp.dot(x, wqkv_ref[...], preferred_element_type=jnp.float32)
           + bqkv_ref[...]).astype(jnp.bfloat16)          # (S, 3H) bf16

    outs = []
    for h in range(num_heads):
        # Static column slices of the fused QKV value (per-head views).
        q = qkv[:, h * dH:(h + 1) * dH]
        k = qkv[:, H + h * dH: H + (h + 1) * dH]
        v = qkv[:, 2 * H + h * dH: 2 * H + (h + 1) * dH]

        # QK^T via dot_general contracting the last dims (no explicit k.T transpose).
        s = jax.lax.dot_general(
            q, k, dimension_numbers=(((1,), (1,)), ((), ())),
            preferred_element_type=jnp.float32)
        s = s * scale + m                                   # scale folded into f32 scores
        s = s - jnp.max(s, axis=-1, keepdims=True)
        p = jnp.exp(s)
        inv = pl.reciprocal(jnp.sum(p, axis=-1, keepdims=True), approx=True)
        p = (p * inv).astype(jnp.bfloat16)

        # Per-head context, cast to bf16 immediately to keep live VMEM small.
        outs.append(jnp.dot(p, v, preferred_element_type=jnp.float32).astype(jnp.bfloat16))

    ctx = jnp.concatenate(outs, axis=-1)                    # (S, H) bf16, lane-dense

    # Output projection + residual + LayerNorm epilogue (all in VMEM).
    y = jnp.dot(ctx, wo_ref[...], preferred_element_type=jnp.float32) + bo_ref[...]
    hres = y + x.astype(jnp.float32)
    o_ref[0] = _layernorm_f32(hres, g_ref[...], bln_ref[...], eps).astype(o_ref.dtype)


def _ffn_block_kernel(x_ref, wi_ref, bi_ref, wout_ref, bout_ref, g_ref, bln_ref,
                      o_ref, *, eps):
    """o = LayerNorm(gelu(x @ wi + bi) @ wout + bout + x).  Intermediate stays in VMEM."""
    x = x_ref[...]                                          # (tm, H) bf16
    h = jnp.dot(x, wi_ref[...], preferred_element_type=jnp.float32) + bi_ref[...]
    # TODO(synk): HF RoBERTa uses exact erf-GELU; tanh approximation used for Mosaic portability.
    h = jax.nn.gelu(h, approximate=True).astype(jnp.bfloat16)
    y = jnp.dot(h, wout_ref[...], preferred_element_type=jnp.float32) + bout_ref[...]
    hres = y + x.astype(jnp.float32)
    o_ref[...] = _layernorm_f32(hres, g_ref[...], bln_ref[...], eps).astype(o_ref.dtype)


# ----------------------------------------------------------------------------
# Pallas wrappers
# ----------------------------------------------------------------------------

def layernorm_pallas(x, gamma, beta, eps=1e-5):
    """LayerNorm over the last dim.  x: (M, H) f32/bf16 -> (M, H) bf16."""
    M, H = x.shape
    tm = _row_tile(M)
    kernel = functools.partial(_ln_kernel, eps=eps)
    return pl.pallas_call(
        kernel,
        out_shape=jax.ShapeDtypeStruct((M, H), jnp.bfloat16),
        grid=(M // tm,),
        in_specs=[
            pl.BlockSpec((tm, H), lambda i: (i, 0)),
            pl.BlockSpec((1, H), lambda i: (0, 0)),
            pl.BlockSpec((1, H), lambda i: (0, 0)),
        ],
        out_specs=pl.BlockSpec((tm, H), lambda i: (i, 0)),
        compiler_params=_cparams("parallel"),
    )(x, gamma.reshape(1, H).astype(jnp.float32), beta.reshape(1, H).astype(jnp.float32))


def attention_block_pallas(x, wqkv, bqkv, wo, bo, gamma, beta, addmask, num_heads,
                           eps=1e-5):
    """x: (B, S, H) bf16, addmask: (B, 1, S) f32 -> (B, S, H) bf16 post-attention+LN."""
    B, S, H = x.shape
    scale = 1.0 / math.sqrt(H // num_heads)
    kernel = functools.partial(_attention_block_kernel, num_heads=num_heads,
                               scale=scale, eps=eps)
    return pl.pallas_call(
        kernel,
        out_shape=jax.ShapeDtypeStruct((B, S, H), jnp.bfloat16),
        grid=(B,),
        in_specs=[
            pl.BlockSpec((1, S, H), lambda b: (b, 0, 0)),
            pl.BlockSpec((H, 3 * H), lambda b: (0, 0)),
            pl.BlockSpec((1, 3 * H), lambda b: (0, 0)),
            pl.BlockSpec((1, 1, S), lambda b: (b, 0, 0)),
            pl.BlockSpec((H, H), lambda b: (0, 0)),
            pl.BlockSpec((1, H), lambda b: (0, 0)),
            pl.BlockSpec((1, H), lambda b: (0, 0)),
            pl.BlockSpec((1, H), lambda b: (0, 0)),
        ],
        out_specs=pl.BlockSpec((1, S, H), lambda b: (b, 0, 0)),
        compiler_params=_cparams("parallel"),
    )(x, wqkv, bqkv.reshape(1, 3 * H).astype(jnp.float32), addmask, wo,
      bo.reshape(1, H).astype(jnp.float32),
      gamma.reshape(1, H).astype(jnp.float32),
      beta.reshape(1, H).astype(jnp.float32))


def ffn_block_pallas(x, wi, bi, wout, bout, gamma, beta, eps=1e-5):
    """x: (M, H) bf16 -> LayerNorm(gelu(x@wi+bi)@wout+bout + x): (M, H) bf16."""
    M, H = x.shape
    inter = wi.shape[1]
    tm = _row_tile(M)
    kernel = functools.partial(_ffn_block_kernel, eps=eps)
    return pl.pallas_call(
        kernel,
        out_shape=jax.ShapeDtypeStruct((M, H), jnp.bfloat16),
        grid=(M // tm,),
        in_specs=[
            pl.BlockSpec((tm, H), lambda i: (i, 0)),
            pl.BlockSpec((H, inter), lambda i: (0, 0)),
            pl.BlockSpec((1, inter), lambda i: (0, 0)),
            pl.BlockSpec((inter, H), lambda i: (0, 0)),
            pl.BlockSpec((1, H), lambda i: (0, 0)),
            pl.BlockSpec((1, H), lambda i: (0, 0)),
            pl.BlockSpec((1, H), lambda i: (0, 0)),
        ],
        out_specs=pl.BlockSpec((tm, H), lambda i: (i, 0)),
        compiler_params=_cparams("parallel"),
    )(x, wi, bi.reshape(1, inter).astype(jnp.float32), wout,
      bout.reshape(1, H).astype(jnp.float32),
      gamma.reshape(1, H).astype(jnp.float32),
      beta.reshape(1, H).astype(jnp.float32))


# ----------------------------------------------------------------------------
# Parameter init (deterministic, synthetic — no checkpoint load)
# ----------------------------------------------------------------------------

def init_params(key, *, vocab, max_pos, type_vocab, hidden, inter, num_heads, num_layers):
    def nrm(k, shape, dtype=jnp.bfloat16):
        return (0.02 * jax.random.normal(k, shape, dtype=jnp.float32)).astype(dtype)

    keys = jax.random.split(key, 4 + num_layers)
    params = {
        "num_heads": num_heads,
        "word_emb": nrm(keys[0], (vocab, hidden), jnp.float32),
        "pos_emb": nrm(keys[1], (max_pos, hidden), jnp.float32),
        "type_emb": nrm(keys[2], (type_vocab, hidden), jnp.float32),
        "emb_ln_g": jnp.ones((hidden,), jnp.float32),
        "emb_ln_b": jnp.zeros((hidden,), jnp.float32),
        "layers": [],
    }
    for li in range(num_layers):
        lk = jax.random.split(keys[4 + li], 6)
        # Fused Q|K|V projection weight (hidden, 3*hidden).
        wqkv = jnp.concatenate(
            [nrm(lk[0], (hidden, hidden)), nrm(lk[1], (hidden, hidden)),
             nrm(lk[2], (hidden, hidden))], axis=1)
        params["layers"].append({
            "wqkv": wqkv, "bqkv": jnp.zeros((3 * hidden,), jnp.float32),
            "wo": nrm(lk[3], (hidden, hidden)), "bo": jnp.zeros((hidden,), jnp.float32),
            "ln1_g": jnp.ones((hidden,), jnp.float32), "ln1_b": jnp.zeros((hidden,), jnp.float32),
            "wi": nrm(lk[4], (hidden, inter)), "bi": jnp.zeros((inter,), jnp.float32),
            "wout": nrm(lk[5], (inter, hidden)), "bout": jnp.zeros((hidden,), jnp.float32),
            "ln2_g": jnp.ones((hidden,), jnp.float32), "ln2_b": jnp.zeros((hidden,), jnp.float32),
        })
    hk = jax.random.split(keys[3], 2)
    params["head_dense_w"] = nrm(hk[0], (hidden, hidden))
    params["head_dense_b"] = jnp.zeros((hidden,), jnp.float32)
    params["head_out_w"] = nrm(hk[1], (hidden, 1))     # num_labels = 1
    params["head_out_b"] = jnp.zeros((1,), jnp.float32)
    return params


# ----------------------------------------------------------------------------
# RobertaClass.forward equivalent
# ----------------------------------------------------------------------------

def roberta_class_forward(params, input_ids, attention_mask, token_type_ids,
                          predict=False, model_type="regressor"):
    B, S = input_ids.shape
    H = params["word_emb"].shape[1]
    nH = params["num_heads"]
    pad_idx = 1

    # RoBERTa-style position ids (glue, in plain JAX).
    valid = (input_ids != pad_idx).astype(jnp.int32)
    pos_ids = jnp.cumsum(valid, axis=1) * valid + pad_idx

    # Embedding gathers (glue; no clean Pallas gather equivalent for tiny tables).
    emb = (jnp.take(params["word_emb"], input_ids, axis=0)
           + jnp.take(params["pos_emb"], pos_ids, axis=0)
           + jnp.take(params["type_emb"], token_type_ids, axis=0))          # (B,S,H) f32

    # Embedding LayerNorm on the f32 sum (stats in f32), output bf16 hidden states.
    x = layernorm_pallas(emb.reshape(B * S, H), params["emb_ln_g"], params["emb_ln_b"])
    x = x.reshape(B, S, H)

    addmask = ((1.0 - attention_mask.astype(jnp.float32)) * -1e9).reshape(B, 1, S)

    for layer in params["layers"]:
        # Fully fused attention block: QKV proj + softmax attention + out proj + res + LN.
        x = attention_block_pallas(x, layer["wqkv"], layer["bqkv"], layer["wo"],
                                   layer["bo"], layer["ln1_g"], layer["ln1_b"],
                                   addmask, nH)

        # Fully fused FFN block: gelu up-proj + down-proj + res + LN (intermediate in VMEM).
        x = ffn_block_pallas(x.reshape(B * S, H), layer["wi"], layer["bi"],
                             layer["wout"], layer["bout"],
                             layer["ln2_g"], layer["ln2_b"]).reshape(B, S, H)

    # RobertaClassificationHead: take <s> (first token), dense+tanh, out_proj -> 1 logit.
    # Tiny (M=B, N<=H / N=1) matmuls — left to XLA, emitting f32 logits directly.
    cls = x[:, 0, :].astype(jnp.float32)
    hcls = jnp.tanh(cls @ params["head_dense_w"].astype(jnp.float32)
                    + params["head_dense_b"])
    logits = hcls @ params["head_out_w"].astype(jnp.float32) + params["head_out_b"]

    # RobertaClass.forward post-processing.
    if predict and model_type == "classifier":
        logits = jax.nn.sigmoid(logits)
    # self.calibrator is None in __init__ -> no calibration step.
    return logits


# ----------------------------------------------------------------------------
# Main
# ----------------------------------------------------------------------------

if __name__ == "__main__":
    B, S = 2, 8
    VOCAB, MAX_POS, TYPE_VOCAB = 50, 16, 1
    HIDDEN, INTER, NUM_HEADS, NUM_LAYERS = 32, 64, 4, 2

    root = jax.random.PRNGKey(0)
    pkey, ikey = jax.random.split(root)

    params = init_params(pkey, vocab=VOCAB, max_pos=MAX_POS, type_vocab=TYPE_VOCAB,
                         hidden=HIDDEN, inter=INTER, num_heads=NUM_HEADS,
                         num_layers=NUM_LAYERS)

    input_ids = jax.random.randint(ikey, (B, S), 2, VOCAB, dtype=jnp.int32)
    attention_mask = jnp.ones((B, S), jnp.int32)
    # add a bit of padding in the second sequence
    input_ids = input_ids.at[1, -2:].set(1)
    attention_mask = attention_mask.at[1, -2:].set(0)
    token_type_ids = jnp.zeros((B, S), jnp.int32)

    logits = roberta_class_forward(params, input_ids, attention_mask, token_type_ids,
                                   predict=False, model_type="regressor")
    logits = jax.block_until_ready(logits)
    assert logits.shape == (B, 1) and logits.dtype == jnp.float32
    print("KERNEL_OK")
</pallas_src>

<mosaic_0001>
module attributes {stable_mosaic.version = 11 : i64} {
  func.func @_ln_kernel(%arg0: i32, %arg1: memref<16x32xf32, #tpu.memory_space<vmem>>, %arg2: memref<1x32xf32, #tpu.memory_space<vmem>>, %arg3: memref<1x32xf32, #tpu.memory_space<vmem>>, %arg4: memref<16x32xbf16, #tpu.memory_space<vmem>>) attributes {dimension_semantics = [#tpu.dimension_semantics<parallel>], iteration_bounds = array<i64: 1>, scalar_prefetch = 0 : i64, scratch_operands = 0 : i64, tpu.core_type = #tpu.core_type<tc>, window_params = [{transform_indices = @transform_0, window_bounds = array<i64: 16, 32>}, {pipeline_mode = #tpu.pipeline_mode<synchronous>, transform_indices = @transform_1, window_bounds = array<i64: 1, 32>}, {pipeline_mode = #tpu.pipeline_mode<synchronous>, transform_indices = @transform_2, window_bounds = array<i64: 1, 32>}, {transform_indices = @transform_3, window_bounds = array<i64: 16, 32>}]} {
    %c0 = arith.constant 0 : index
    %c0_0 = arith.constant 0 : index
    %0 = vector.load %arg1[%c0, %c0_0] : memref<16x32xf32, #tpu.memory_space<vmem>>, vector<16x32xf32>
    %c0_1 = arith.constant 0 : index
    %c0_2 = arith.constant 0 : index
    %1 = vector.load %arg2[%c0_1, %c0_2] : memref<1x32xf32, #tpu.memory_space<vmem>>, vector<1x32xf32>
    %c0_3 = arith.constant 0 : index
    %c0_4 = arith.constant 0 : index
    %2 = vector.load %arg3[%c0_3, %c0_4] : memref<1x32xf32, #tpu.memory_space<vmem>>, vector<1x32xf32>
    %cst = arith.constant dense<0.000000e+00> : vector<16xf32>
    %3 = vector.multi_reduction <add>, %0, %cst [1] : vector<16x32xf32> to vector<16xf32>
    %4 = vector.shape_cast %3 : vector<16xf32> to vector<16x1xf32>
    %cst_5 = arith.constant 3.200000e+01 : f32
    %5 = vector.broadcast %cst_5 : f32 to vector<16x1xf32>
    %6 = arith.divf %4, %5 : vector<16x1xf32>
    %7 = vector.broadcast %6 : vector<16x1xf32> to vector<16x32xf32>
    %8 = arith.subf %0, %7 : vector<16x32xf32>
    %9 = arith.mulf %8, %8 : vector<16x32xf32>
    %cst_6 = arith.constant dense<0.000000e+00> : vector<16xf32>
    %10 = vector.multi_reduction <add>, %9, %cst_6 [1] : vector<16x32xf32> to vector<16xf32>
    %11 = vector.shape_cast %10 : vector<16xf32> to vector<16x1xf32>
    %cst_7 = arith.constant 3.200000e+01 : f32
    %12 = vector.broadcast %cst_7 : f32 to vector<16x1xf32>
    %13 = arith.divf %11, %12 : vector<16x1xf32>
    %14 = vector.broadcast %6 : vector<16x1xf32> to vector<16x32xf32>
    %15 = arith.subf %0, %14 : vector<16x32xf32>
    %cst_8 = arith.constant 9.99999974E-6 : f32
    %16 = vector.broadcast %cst_8 : f32 to vector<16x1xf32>
    %17 = arith.addf %13, %16 : vector<16x1xf32>
    %18 = math.rsqrt %17 : vector<16x1xf32>
    %19 = vector.broadcast %18 : vector<16x1xf32> to vector<16x32xf32>
    %20 = arith.mulf %15, %19 : vector<16x32xf32>
    %21 = vector.broadcast %1 : vector<1x32xf32> to vector<16x32xf32>
    %22 = arith.mulf %20, %21 : vector<16x32xf32>
    %23 = vector.broadcast %2 : vector<1x32xf32> to vector<16x32xf32>
    %24 = arith.addf %22, %23 : vector<16x32xf32>
    %25 = arith.truncf %24 : vector<16x32xf32> to vector<16x32xbf16>
    %c0_9 = arith.constant 0 : index
    %c0_10 = arith.constant 0 : index
    %26 = vector.load %arg4[%c0_9, %c0_10] : memref<16x32xbf16, #tpu.memory_space<vmem>>, vector<16x32xbf16>
    tpu.vector_store %arg4[%c0_9, %c0_10], %25 {strides = array<i32>} : memref<16x32xbf16, #tpu.memory_space<vmem>>, vector<16x32xbf16>,
    return
  }
  func.func @transform_0(%arg0: i32) -> (i32, i32) {
    %c0_i32 = arith.constant 0 : i32
    %c0_i32_0 = arith.constant 0 : i32
    return %arg0, %c0_i32 : i32, i32
  }
  func.func @transform_1(%arg0: i32) -> (i32, i32) {
    %c0_i32 = arith.constant 0 : i32
    %c0_i32_0 = arith.constant 0 : i32
    %c0_i32_1 = arith.constant 0 : i32
    return %c0_i32, %c0_i32_0 : i32, i32
  }
  func.func @transform_2(%arg0: i32) -> (i32, i32) {
    %c0_i32 = arith.constant 0 : i32
    %c0_i32_0 = arith.constant 0 : i32
    %c0_i32_1 = arith.constant 0 : i32
    return %c0_i32, %c0_i32_0 : i32, i32
  }
  func.func @transform_3(%arg0: i32) -> (i32, i32) {
    %c0_i32 = arith.constant 0 : i32
    %c0_i32_0 = arith.constant 0 : i32
    return %arg0, %c0_i32 : i32, i32
  }
}

</mosaic_0001>

<bundles_post_ra>
// kernel: tpu_custom_call.1
= control target key start
LH: loop header
LB: loop body
LE: loop exit
PB: predicated region body
PF: predicated region fallthrough
CT: control target
= control target key end

     0   :  { %8 = vsyncpa [#allocation3], 0  ;;  %s328_s0 = inlined_call_operand.hbm [shape: f32[16,32], index: 0, kind: input, shape index: {}]   ;;  %s329_s1 = inlined_call_operand.hbm [shape: f32[1,32], index: 1, kind: input, shape index: {}]   ;;  %s330_s2 = inlined_call_operand.hbm [shape: f32[1,32], index: 2, kind: input, shape index: {}]   ;;  %s331_s3 = inlined_call_operand.hbm [shape: bf16[16,32], index: 3, kind: output, shape index: {}]  }
   0x1   :  { %9 = vsyncpa [#allocation6], 0 }
   0x2   :  { %10 = vsyncpa [#allocation4], 0  ;;  %s241_s12 = smov [#allocation5]   ;;  %s242_s14 = smov [#allocation2]  }
   0x3   :  { %s29_s13 = sshll.u32 %s241_s12, 4  ;;  %s16_s15 = sshll.u32 %s242_s14, 4  ;;  %s30_s13 = int_to_ptr.vmem [resolvable:$true] %s29_s13  ;;  %s269_s15 = int_to_ptr.vmem [resolvable:$true] %s16_s15 }
   0x4   :  { %s147_s18 = scalar_lea.hbm %s329_s1, 16 }
   0x5   :  { %p148_p0 = scmp.ne.s32.totalorder %s329_s1, %s147_s18  ;;  %p151_p1 = scmp.lt.u32.totalorder %s147_s18, %s329_s1 }
   0x7   :  { %p153_p2 = pnand %p151_p1, %p148_p0 }
   0x9   :  { %156 = shalt.err (!%p153_p2)
}
   0xa   :  { %s157_s23 = scalar_lea.vmem %s30_s13, 16  ;;  %s161_s24 = scalar_lea.vmem %s30_s13, 32 }
   0xb   :  { %p158_p3 = scmp.ne.s32.totalorder %s30_s13, %s157_s23  ;;  %p162_p4 = scmp.lt.s32.totalorder %s30_s13, %s30_s13 }
   0xc   :  { %p163_p5 = scmp.lt.s32.totalorder %s161_s24, %s157_s23 }
   0xe   :  { %p164_p6 = por %p163_p5, %p162_p4 }
  0x10   :  { %p165_p7 = pnand %p164_p6, %p158_p3 }
  0x12   :  { %168 = shalt.err (!%p165_p7)
}
  0x13   :  { %32 = dma.hbm_to_vmem [thread:$0]  %s329_s1, 16, %s30_s13, [#allocation6]  }
  0x14   :  { %s169_s29 = scalar_lea.hbm %s328_s0, 256 }
  0x15   :  { %p170_p8 = scmp.ne.s32.totalorder %s328_s0, %s169_s29  ;;  %p173_p9 = scmp.lt.u32.totalorder %s169_s29, %s328_s0 }
  0x17   :  { %p175_p10 = pnand %p173_p9, %p170_p8 }
  0x19   :  { %178 = shalt.err (!%p175_p10)
}
  0x1a   :  { %s179_s7 = scalar_lea.vmem %s269_s15, 256  ;;  %p184_p12 = scmp.lt.s32.totalorder %s269_s15, %s269_s15 }
  0x1b   :  { %p180_p11 = scmp.ne.s32.totalorder %s269_s15, %s179_s7  ;;  %p185_p13 = scmp.lt.s32.totalorder %s179_s7, %s179_s7 }
  0x1d   :  { %p186_p0 = por %p185_p13, %p184_p12 }
  0x1f   :  { %p187_p1 = pnand %p186_p0, %p180_p11 }
  0x21   :  { %190 = shalt.err (!%p187_p1)
}
  0x22   :  { %s243_s1 = smov 128   ;;  %s244_s8 = smov 8  }
  0x23   :  { %22 = dma.hbm_to_vmem [thread:$0]  %s328_s0, 256, %s269_s15, [#allocation3], %s243_s1, %s243_s1, %s244_s8  }
  0x24   :  { %s245_s11 = smov [#allocation7]   ;;  %s191_s16 = scalar_lea.hbm %s330_s2, 16 }
  0x25   :  { %s39_s12 = sshll.u32 %s245_s11, 4  ;;  %p192_p2 = scmp.ne.s32.totalorder %s330_s2, %s191_s16  ;;  %s40_s12 = int_to_ptr.vmem [resolvable:$true] %s39_s12 }
  0x26   :  { %p195_p3 = scmp.lt.u32.totalorder %s191_s16, %s330_s2 }
  0x28   :  { %p197_p4 = pnand %p195_p3, %p192_p2 }
  0x2a   :  { %200 = shalt.err (!%p197_p4)
}
  0x2b   :  { %s201_s21 = scalar_lea.vmem %s40_s12, 16  ;;  %s205_s0 = scalar_lea.vmem %s40_s12, 32 }
  0x2c   :  { %p202_p5 = scmp.ne.s32.totalorder %s40_s12, %s201_s21  ;;  %p206_p6 = scmp.lt.s32.totalorder %s40_s12, %s40_s12 }
  0x2d   :  { %p207_p7 = scmp.lt.s32.totalorder %s205_s0, %s201_s21 }
  0x2f   :  { %p208_p8 = por %p207_p7, %p206_p6 }
  0x31   :  { %p209_p9 = pnand %p208_p8, %p202_p5 }
  0x33   :  { %212 = shalt.err (!%p209_p9)
}
  0x34   :  { %42 = dma.hbm_to_vmem [thread:$0]  %s330_s2, 16, %s40_s12, [#allocation6]  }
  0x35   :  { %235 = dma.done.wait [#allocation3], 256  }
  0x36   :  { %236 = vsyncadd [#allocation3], 4294967040 }
  0x37   :  { %237 = dma.done.wait [#allocation6], 32  }
  0x38   :  { %238 = vsyncadd [#allocation6], 4294967264  ;;  %vm56_vm0 = vcmask 261120   ;;  %v52_v0 = vld [vmem:[#allocation2] sm:$0xff]  ;;  %v53_v1 = vld [vmem:[#allocation2 + $0x8] sm:$0xff]  ;;  %vm108_vm1 = vcmask 257024  }
  0x39   :  { %v57_v2 = vsel %vm56_vm0, %v52_v0, 0.0  ;;  %v60_v3 = vsel %vm56_vm0, %v53_v1, 0.0  ;;  %v129_v21 = vld [vmem:[#allocation5] ss:$0 sm:$0xff]  ;;  %v130_v23 = vld [vmem:[#allocation7] ss:$0 sm:$0xff] }
  0x3a   :  { %58 = vadd.xlane.f32.xlu0 %v57_v2  ;;  %s246_s2 = smov [#allocation8]  }
  0x3b   :  { %s116_s23 = sshll.u32 %s246_s2, 4  ;;  %s117_s23 = int_to_ptr.vmem [resolvable:$true] %s116_s23 }
  0x3c   :  { %s213_s24 = scalar_lea.vmem %s117_s23, 128  ;;  %p218_p11 = scmp.lt.s32.totalorder %s117_s23, %s117_s23 }
  0x3d   :  { %p214_p10 = scmp.ne.s32.totalorder %s117_s23, %s213_s24  ;;  %p219_p12 = scmp.lt.s32.totalorder %s213_s24, %s213_s24 }
  0x3e   :  { %61 = vadd.xlane.f32.xlu0 %v60_v3 }
  0x3f   :  { %p220_p13 = por %p219_p12, %p218_p11 }
  0x41   :  { %p221_p0 = pnand %p220_p13, %p214_p10 }
  0xc7   :  { %v59_v4 = vpop.xlane.xlu0 %58 }
  0xc8   :  { %v64_v5 = vmul.f32 0.03125, %v59_v4 }
  0xca   :  { %v66_v6 = vsub.f32 %v52_v0, %v64_v5 }
  0xcb   :  { %v62_v7 = vpop.xlane.xlu0 %61 }
  0xcc   :  { %v65_v8 = vmul.f32 0.03125, %v62_v7  ;;  %v68_v9 = vmul.f32 %v66_v6, %v66_v6 }
  0xce   :  { %v67_v10 = vsub.f32 %v53_v1, %v65_v8  ;;  %v70_v11 = vsel %vm56_vm0, %v68_v9, 0.0 }
  0xcf   :  { %71 = vadd.xlane.f32.xlu1 %v70_v11 }
  0xd0   :  { %v69_v12 = vmul.f32 %v67_v10, %v67_v10 }
  0xd2   :  { %v73_v13 = vsel %vm56_vm0, %v69_v12, 0.0 }
  0xd3   :  { %74 = vadd.xlane.f32.xlu1 %v73_v13 }
 0x15c   :  { %v72_v14 = vpop.xlane.xlu1 %71 }
 0x15d   :  { %v76_v15 = vmul.f32 0.03125, %v72_v14 }
 0x15f   :  { %v78_v16 = vadd.f32 1e-05, %v76_v15 }
 0x160   :  { %v75_v17 = vpop.xlane.xlu1 %74 }
 0x161   :  { %143 = vrsqrt.f32 %v78_v16  ;;  %v77_v18 = vmul.f32 0.03125, %v75_v17 }
 0x163   :  { %v79_v19 = vadd.f32 1e-05, %v77_v18 }
 0x165   :  { %145 = vrsqrt.f32 %v79_v19 }
 0x16b   :  { %v144_v20 = vpop.eup %143 }
 0x16c   :  { %v82_v22 = vmul.f32 %v144_v20, %v66_v6 }
 0x16e   :  { %v90_v24 = vmul.f32 %v129_v21, %v82_v22 }
 0x16f   :  { %v146_v25 = vpop.eup %145 }
 0x170   :  { %v83_v26 = vmul.f32 %v146_v25, %v67_v10  ;;  %v98_v27 = vadd.f32 %v130_v23, %v90_v24 }
 0x172   :  { %v91_v28 = vmul.f32 %v129_v21, %v83_v26  ;;  %v133_v29 = vpack.c.bf16 %v98_v27, %v98_v27 }
 0x174   :  { %v99_v30 = vadd.f32 %v130_v23, %v91_v28  ;;  %109 = vst.msk [vmem:[#allocation8] sm:$0xf] %vm108_vm1, %v133_v29 }
 0x176   :  { %v134_v31 = vpack.c.bf16 %v99_v30, %v99_v30 }
 0x178   :  { %110 = vst.msk [vmem:[#allocation8 + $0x4] sm:$0xf] %vm108_vm1, %v134_v31 }
 0x179   :  { %224 = shalt.err (!%p221_p0)
}
 0x17a   :  { %s225_s27 = scalar_lea.hbm %s331_s3, 128 }
 0x17b   :  { %p226_p1 = scmp.ne.s32.totalorder %s331_s3, %s225_s27  ;;  %p229_p2 = scmp.lt.u32.totalorder %s225_s27, %s331_s3 }
 0x17d   :  { %p231_p3 = pnand %p229_p2, %p226_p1 }
 0x17f   :  { %234 = shalt.err (!%p231_p3)
}
 0x180   :  { %s247_s5 = smov 64   ;;  %s248_s6 = smov 4  }
 0x181   :  { %122 = dma.vmem_to_hbm [thread:$0]  %s117_s23, 128, %s331_s3, [#allocation4], %s247_s5, %s247_s5, %s248_s6  }
 0x182   :  { %239 = dma.done.wait [#allocation4], 128  }
 0x183   :  { %240 = vsyncadd [#allocation4], 4294967168 }
 0x184   :  { %126 = vsyncpa [#allocation3], 1 }
 0x185   :  { %127 = vsyncpa [#allocation6], 1 }
 0x186   :  { %128 = vsyncpa [#allocation4], 1 }

</bundles_post_ra>
